<compile_context>
chip_gen: v7x
topology: tpu7x:2x2x1
jax: 0.10.0
libtpu: 0.0.40
codegen_flags: <defaults>
</compile_context>

<pallas_src>
import functools

import jax
import jax.numpy as jnp
from jax.experimental import pallas as pl
from jax.experimental.pallas import tpu as pltpu


def _mlp_kernel(*refs, n_layers: int):
    # refs = (x_ref, w0, b0, w1, b1, ..., w_{L-1}, b_{L-1}, o_ref)
    x_ref = refs[0]
    o_ref = refs[-1]
    wb_refs = refs[1:-1]

    h = x_ref[...].astype(jnp.float32)
    for k in range(n_layers):
        w = wb_refs[2 * k][...].astype(jnp.float32)
        b = wb_refs[2 * k + 1][...].astype(jnp.float32)
        # MXU matmul with f32 accumulation + bias add.
        h = jnp.dot(h, w, preferred_element_type=jnp.float32) + b
        if k != n_layers - 1:
            # SiLU(h) = h * sigmoid(h); jax.nn.sigmoid lowers to the EUP
            # logistic path (free slot) and is numerically stable.
            h = h * jax.nn.sigmoid(h)
    o_ref[...] = h.astype(o_ref.dtype)


def _round_up(a: int, b: int) -> int:
    return (a + b - 1) // b * b


def mlp_forward(x, params, *, tm: int = 256):
    """Fused MLP forward. x: (M, K0); params: list of (w_k (K_k, N_k), b_k (1, N_k))."""
    M, K0 = x.shape
    n_layers = len(params)
    assert n_layers >= 1
    assert params[0][0].shape[0] == K0
    n_out = params[-1][0].shape[1]

    # Pick a batch tile: multiple of 8 (sublane), capped at tm, covering M.
    tm_eff = min(tm, _round_up(M, 8))
    m_pad = _round_up(M, tm_eff)
    if m_pad != M:
        x = jnp.pad(x, ((0, m_pad - M), (0, 0)))
    grid_m = m_pad // tm_eff

    # BlockSpecs: x/out tiled over M; all weights/biases are full-array blocks
    # (same block index every grid step -> loaded once, resident in VMEM).
    in_specs = [pl.BlockSpec((tm_eff, K0), lambda i: (0, 0) if False else (i, 0))]
    flat_params = []
    for w, b in params:
        k_in, k_out = w.shape
        assert b.shape == (1, k_out)
        in_specs.append(pl.BlockSpec((k_in, k_out), lambda i: (0, 0)))
        in_specs.append(pl.BlockSpec((1, k_out), lambda i: (0, 0)))
        flat_params.extend([w, b])

    out = pl.pallas_call(
        functools.partial(_mlp_kernel, n_layers=n_layers),
        out_shape=jax.ShapeDtypeStruct((m_pad, n_out), x.dtype),
        grid=(grid_m,),
        in_specs=in_specs,
        out_specs=pl.BlockSpec((tm_eff, n_out), lambda i: (i, 0)),
        compiler_params=pltpu.CompilerParams(
            # Batch tiles are independent -> shard across TensorCores (v7x).
            dimension_semantics=("parallel",),
        ),
    )(x, *flat_params)

    return out[:M]


def init_mlp_params(key, layer_vec):
    """Deterministic init mimicking nn.Linear default (uniform +/- 1/sqrt(fan_in))."""
    params = []
    for k in range(len(layer_vec) - 1):
        fan_in, fan_out = layer_vec[k], layer_vec[k + 1]
        key, kw, kb = jax.random.split(key, 3)
        bound = 1.0 / jnp.sqrt(jnp.asarray(fan_in, jnp.float32))
        w = jax.random.uniform(kw, (fan_in, fan_out), jnp.float32, -bound, bound)
        b = jax.random.uniform(kb, (1, fan_out), jnp.float32, -bound, bound)
        params.append((w, b))
    return params


def mlp_reference(x, params):
    n_layers = len(params)
    for k, (w, b) in enumerate(params):
        x = x @ w + b
        if k != n_layers - 1:
            x = x * jax.nn.sigmoid(x)
    return x


if __name__ == "__main__":
    layer_vec = [32, 64, 64, 16]
    batch = 8

    key = jax.random.PRNGKey(0)
    key, kx = jax.random.split(key)
    x = jax.random.normal(kx, (batch, layer_vec[0]), jnp.float32)
    params = init_mlp_params(key, layer_vec)

    out = mlp_forward(x, params)
    out = jax.block_until_ready(out)

    ref = mlp_reference(x, params)
    assert out.shape == (batch, layer_vec[-1])
    assert jnp.allclose(out, ref, atol=1e-5, rtol=1e-5)

    print("KERNEL_OK")
</pallas_src>

<mosaic_0001>
module attributes {stable_mosaic.version = 11 : i64} {
  func.func @_mlp_kernel(%arg0: i32, %arg1: memref<8x32xf32, #tpu.memory_space<vmem>>, %arg2: memref<32x64xf32, #tpu.memory_space<vmem>>, %arg3: memref<1x64xf32, #tpu.memory_space<vmem>>, %arg4: memref<64x64xf32, #tpu.memory_space<vmem>>, %arg5: memref<1x64xf32, #tpu.memory_space<vmem>>, %arg6: memref<64x16xf32, #tpu.memory_space<vmem>>, %arg7: memref<1x16xf32, #tpu.memory_space<vmem>>, %arg8: memref<8x16xf32, #tpu.memory_space<vmem>>) attributes {dimension_semantics = [#tpu.dimension_semantics<parallel>], iteration_bounds = array<i64: 1>, scalar_prefetch = 0 : i64, scratch_operands = 0 : i64, tpu.core_type = #tpu.core_type<tc>, window_params = [{transform_indices = @transform_0, window_bounds = array<i64: 8, 32>}, {pipeline_mode = #tpu.pipeline_mode<synchronous>, transform_indices = @transform_1, window_bounds = array<i64: 32, 64>}, {pipeline_mode = #tpu.pipeline_mode<synchronous>, transform_indices = @transform_2, window_bounds = array<i64: 1, 64>}, {pipeline_mode = #tpu.pipeline_mode<synchronous>, transform_indices = @transform_3, window_bounds = array<i64: 64, 64>}, {pipeline_mode = #tpu.pipeline_mode<synchronous>, transform_indices = @transform_4, window_bounds = array<i64: 1, 64>}, {pipeline_mode = #tpu.pipeline_mode<synchronous>, transform_indices = @transform_5, window_bounds = array<i64: 64, 16>}, {pipeline_mode = #tpu.pipeline_mode<synchronous>, transform_indices = @transform_6, window_bounds = array<i64: 1, 16>}, {transform_indices = @transform_7, window_bounds = array<i64: 8, 16>}]} {
    %c0 = arith.constant 0 : index
    %c0_0 = arith.constant 0 : index
    %0 = vector.load %arg1[%c0, %c0_0] : memref<8x32xf32, #tpu.memory_space<vmem>>, vector<8x32xf32>
    %c0_1 = arith.constant 0 : index
    %c0_2 = arith.constant 0 : index
    %1 = vector.load %arg2[%c0_1, %c0_2] : memref<32x64xf32, #tpu.memory_space<vmem>>, vector<32x64xf32>
    %c0_3 = arith.constant 0 : index
    %c0_4 = arith.constant 0 : index
    %2 = vector.load %arg3[%c0_3, %c0_4] : memref<1x64xf32, #tpu.memory_space<vmem>>, vector<1x64xf32>
    %cst = arith.constant dense<0.000000e+00> : vector<8x64xf32>
    %3 = tpu.matmul %0, %1, %cst {dimension_numbers = #tpu.dot_dimension_numbers<[1], [0], [0], [1], [0, 0, 1, 1], [], []>} : vector<8x32xf32>, vector<32x64xf32>, vector<8x64xf32> -> vector<8x64xf32>
    %4 = vector.broadcast %2 : vector<1x64xf32> to vector<8x64xf32>
    %5 = arith.addf %3, %4 : vector<8x64xf32>
    %6 = arith.negf %5 : vector<8x64xf32>
    %7 = math.exp %6 : vector<8x64xf32>
    %cst_5 = arith.constant 1.000000e+00 : f32
    %8 = vector.broadcast %cst_5 : f32 to vector<8x64xf32>
    %9 = arith.addf %8, %7 : vector<8x64xf32>
    %10 = arith.divf %8, %9 : vector<8x64xf32>
    %11 = arith.mulf %5, %10 : vector<8x64xf32>
    %c0_6 = arith.constant 0 : index
    %c0_7 = arith.constant 0 : index
    %12 = vector.load %arg4[%c0_6, %c0_7] : memref<64x64xf32, #tpu.memory_space<vmem>>, vector<64x64xf32>
    %c0_8 = arith.constant 0 : index
    %c0_9 = arith.constant 0 : index
    %13 = vector.load %arg5[%c0_8, %c0_9] : memref<1x64xf32, #tpu.memory_space<vmem>>, vector<1x64xf32>
    %cst_10 = arith.constant dense<0.000000e+00> : vector<8x64xf32>
    %14 = tpu.matmul %11, %12, %cst_10 {dimension_numbers = #tpu.dot_dimension_numbers<[1], [0], [0], [1], [0, 0, 1, 1], [], []>} : vector<8x64xf32>, vector<64x64xf32>, vector<8x64xf32> -> vector<8x64xf32>
    %15 = vector.broadcast %13 : vector<1x64xf32> to vector<8x64xf32>
    %16 = arith.addf %14, %15 : vector<8x64xf32>
    %17 = arith.negf %16 : vector<8x64xf32>
    %18 = math.exp %17 : vector<8x64xf32>
    %cst_11 = arith.constant 1.000000e+00 : f32
    %19 = vector.broadcast %cst_11 : f32 to vector<8x64xf32>
    %20 = arith.addf %19, %18 : vector<8x64xf32>
    %21 = arith.divf %19, %20 : vector<8x64xf32>
    %22 = arith.mulf %16, %21 : vector<8x64xf32>
    %c0_12 = arith.constant 0 : index
    %c0_13 = arith.constant 0 : index
    %23 = vector.load %arg6[%c0_12, %c0_13] : memref<64x16xf32, #tpu.memory_space<vmem>>, vector<64x16xf32>
    %c0_14 = arith.constant 0 : index
    %c0_15 = arith.constant 0 : index
    %24 = vector.load %arg7[%c0_14, %c0_15] : memref<1x16xf32, #tpu.memory_space<vmem>>, vector<1x16xf32>
    %cst_16 = arith.constant dense<0.000000e+00> : vector<8x16xf32>
    %25 = tpu.matmul %22, %23, %cst_16 {dimension_numbers = #tpu.dot_dimension_numbers<[1], [0], [0], [1], [0, 0, 1, 1], [], []>} : vector<8x64xf32>, vector<64x16xf32>, vector<8x16xf32> -> vector<8x16xf32>
    %26 = vector.broadcast %24 : vector<1x16xf32> to vector<8x16xf32>
    %27 = arith.addf %25, %26 : vector<8x16xf32>
    %c0_17 = arith.constant 0 : index
    %c0_18 = arith.constant 0 : index
    %28 = vector.load %arg8[%c0_17, %c0_18] : memref<8x16xf32, #tpu.memory_space<vmem>>, vector<8x16xf32>
    tpu.vector_store %arg8[%c0_17, %c0_18], %27 {strides = array<i32>} : memref<8x16xf32, #tpu.memory_space<vmem>>, vector<8x16xf32>,
    return
  }
  func.func @transform_0(%arg0: i32) -> (i32, i32) {
    %c0_i32 = arith.constant 0 : i32
    %c0_i32_0 = arith.constant 0 : i32
    return %arg0, %c0_i32 : i32, i32
  }
  func.func @transform_1(%arg0: i32) -> (i32, i32) {
    %c0_i32 = arith.constant 0 : i32
    %c0_i32_0 = arith.constant 0 : i32
    %c0_i32_1 = arith.constant 0 : i32
    return %c0_i32, %c0_i32_0 : i32, i32
  }
  func.func @transform_2(%arg0: i32) -> (i32, i32) {
    %c0_i32 = arith.constant 0 : i32
    %c0_i32_0 = arith.constant 0 : i32
    %c0_i32_1 = arith.constant 0 : i32
    return %c0_i32, %c0_i32_0 : i32, i32
  }
  func.func @transform_3(%arg0: i32) -> (i32, i32) {
    %c0_i32 = arith.constant 0 : i32
    %c0_i32_0 = arith.constant 0 : i32
    %c0_i32_1 = arith.constant 0 : i32
    return %c0_i32, %c0_i32_0 : i32, i32
  }
  func.func @transform_4(%arg0: i32) -> (i32, i32) {
    %c0_i32 = arith.constant 0 : i32
    %c0_i32_0 = arith.constant 0 : i32
    %c0_i32_1 = arith.constant 0 : i32
    return %c0_i32, %c0_i32_0 : i32, i32
  }
  func.func @transform_5(%arg0: i32) -> (i32, i32) {
    %c0_i32 = arith.constant 0 : i32
    %c0_i32_0 = arith.constant 0 : i32
    %c0_i32_1 = arith.constant 0 : i32
    return %c0_i32, %c0_i32_0 : i32, i32
  }
  func.func @transform_6(%arg0: i32) -> (i32, i32) {
    %c0_i32 = arith.constant 0 : i32
    %c0_i32_0 = arith.constant 0 : i32
    %c0_i32_1 = arith.constant 0 : i32
    return %c0_i32, %c0_i32_0 : i32, i32
  }
  func.func @transform_7(%arg0: i32) -> (i32, i32) {
    %c0_i32 = arith.constant 0 : i32
    %c0_i32_0 = arith.constant 0 : i32
    return %arg0, %c0_i32 : i32, i32
  }
}

</mosaic_0001>

<bundles_post_ra>
// kernel: tpu_custom_call.1
= control target key start
LH: loop header
LB: loop body
LE: loop exit
PB: predicated region body
PF: predicated region fallthrough
CT: control target
= control target key end

     0   :  { %12 = vsyncpa [#allocation3], 0  ;;  %s654_s0 = inlined_call_operand.vmem [shape: f32[8,32], index: 0, kind: input, shape index: {}]   ;;  %s655_s1 = inlined_call_operand.hbm [shape: f32[32,64], index: 1, kind: input, shape index: {}]   ;;  %s656_s2 = inlined_call_operand.vmem [shape: f32[1,64], index: 2, kind: input, shape index: {}]   ;;  %s657_s3 = inlined_call_operand.vmem [shape: f32[64,64], index: 3, kind: input, shape index: {}]   ;;  %s658_s4 = inlined_call_operand.vmem [shape: f32[1,64], index: 4, kind: input, shape index: {}]   ;;  %s659_s5 = inlined_call_operand.vmem [shape: f32[64,16], index: 5, kind: input, shape index: {}]   ;;  %s660_s6 = inlined_call_operand.vmem [shape: f32[1,16], index: 6, kind: input, shape index: {}]   ;;  %s661_s7 = inlined_call_operand.hbm [shape: f32[8,16], index: 7, kind: output, shape index: {}]  }
   0x1   :  { %13 = vsyncpa [#allocation4], 0  ;;  %s508_s24 = smov [#allocation2]   ;;  %s460_s28 = scalar_lea.hbm %s655_s1, 512 }
   0x2   :  { %s21_s25 = sshll.u32 %s508_s24, 4  ;;  %p461_p0 = scmp.ne.s32.totalorder %s655_s1, %s460_s28  ;;  %s22_s25 = int_to_ptr.vmem [resolvable:$true] %s21_s25 }
   0x3   :  { %p464_p1 = scmp.lt.u32.totalorder %s460_s28, %s655_s1 }
   0x5   :  { %p466_p2 = pnand %p464_p1, %p461_p0 }
   0x7   :  { %469 = shalt.err (!%p466_p2)
}
   0x8   :  { %s470_s10 = scalar_lea.vmem %s22_s25, 512  ;;  %p475_p4 = scmp.lt.s32.totalorder %s22_s25, %s22_s25 }
   0x9   :  { %p471_p3 = scmp.ne.s32.totalorder %s22_s25, %s470_s10  ;;  %p476_p5 = scmp.lt.s32.totalorder %s470_s10, %s470_s10 }
   0xb   :  { %p477_p6 = por %p476_p5, %p475_p4 }
   0xd   :  { %p478_p7 = pnand %p477_p6, %p471_p3 }
   0xf   :  { %481 = shalt.err (!%p478_p7)
}
  0x10   :  { %s509_s11 = smov 128   ;;  %s510_s12 = smov 8  }
  0x11   :  { %27 = dma.hbm_to_vmem [thread:$0]  %s655_s1, 512, %s22_s25, [#allocation3], %s509_s11, %s509_s11, %s510_s12  }
  0x12   :  { %504 = dma.done.wait [#allocation3], 512  }
  0x13   :  { %505 = vsyncadd [#allocation3], 4294966784  ;;  %v511_v0 = vmov 0.0|0.0   ;;  %vm512_vm0 = vmmov 0   ;;  %v513_v1 = vmov 0.0   ;;  %v42_v2 = vld [vmem:[#allocation2] sm:$0xff] }
  0x14   :  { %415 = vmatprep.subr.bf16.mxu0 %v511_v0  ;;  %374 = vmatprep.mubr.msk.f32.mxu0 %vm512_vm0, %v513_v1  ;;  %v43_v3 = vld [vmem:[#allocation2 + $0x8] sm:$0xff]  ;;  %v44_v4 = vld [vmem:[#allocation2 + $0x10] sm:$0xff]  ;;  %v45_v6 = vld [vmem:[#allocation2 + $0x18] sm:$0xff]  ;;  %vm53_vm1 = vcmask 261120   ;;  %vm149_vm2 = vcmask 523264   ;;  %s514_s25 = smov [#allocation5]  }
  0x15   :  { %421 = vmatprep.subr.bf16.mxu1 %v511_v0  ;;  %393 = vmatprep.mubr.msk.f32.mxu1 %vm512_vm0, %v513_v1  ;;  %v416_v5 = vpack.c.bf16 %v43_v3, %v42_v2  ;;  %v419_v7 = vpack.c.bf16 %v45_v6, %v44_v4  ;;  %v41_v8 = vld [vmem:[%s654_s0] sm:$0xff]  ;;  %v135_v10 = vld [vmem:[%s657_s3 + $0x8] sm:$0xff]  ;;  %v136_v12 = vld [vmem:[%s657_s3 + $0x10] sm:$0xff]  ;;  %s326_s26 = sshll.u32 %s514_s25, 4  ;;  %vm318_vm3 = vcmask 130048   ;;  %s327_s26 = int_to_ptr.vmem [resolvable:$true] %s326_s26 }
  0x16   :  { %v134_v9 = vld [vmem:[%s657_s3] sm:$0xff]  ;;  %v137_v13 = vld [vmem:[%s657_s3 + $0x18] sm:$0xff]  ;;  %v139_v16 = vld [vmem:[%s657_s3 + $0x28] sm:$0xff]  ;;  %p487_p9 = scmp.lt.s32.totalorder %s327_s26, %s327_s26 }
  0x17   :  { %417 = vmatpush3.bf16.msra.mxu0 %v416_v5  ;;  %v422_v11 = vpack.c.bf16 %v135_v10, %v134_v9  ;;  %v425_v14 = vpack.c.bf16 %v137_v13, %v136_v12  ;;  %v138_v15 = vld [vmem:[%s657_s3 + $0x20] sm:$0xff]  ;;  %v140_v18 = vld [vmem:[%s657_s3 + $0x30] sm:$0xff]  ;;  %v141_v19 = vld [vmem:[%s657_s3 + $0x38] sm:$0xff] }
  0x18   :  { %418 = vmatprep.subr.bf16.mxu0 %v511_v0  ;;  %v428_v17 = vpack.c.bf16 %v139_v16, %v138_v15  ;;  %v431_v20 = vpack.c.bf16 %v141_v19, %v140_v18  ;;  %v335_v21 = vld [vmem:[%s656_s2] ss:$0 sm:$0xff]  ;;  %v231_v31 = vld [vmem:[%s659_s5 + $0x8] sm:$0xff]  ;;  %v232_v33 = vld [vmem:[%s659_s5 + $0x10] sm:$0xff] }
  0x19   :  { %423 = vmatpush3.bf16.msra.mxu1 %v422_v11  ;;  %v230_v30 = vld [vmem:[%s659_s5] sm:$0xff]  ;;  %v233_v34 = vld [vmem:[%s659_s5 + $0x18] sm:$0xff]  ;;  %v235_v37 = vld [vmem:[%s659_s5 + $0x28] sm:$0xff] }
  0x1a   :  { %424 = vmatprep.subr.bf16.mxu1 %v511_v0  ;;  %v434_v32 = vpack.c.bf16 %v231_v31, %v230_v30  ;;  %v437_v35 = vpack.c.bf16 %v233_v34, %v232_v33  ;;  %v234_v36 = vld [vmem:[%s659_s5 + $0x20] sm:$0xff]  ;;  %v236_v39 = vld [vmem:[%s659_s5 + $0x30] sm:$0xff]  ;;  %v237_v40 = vld [vmem:[%s659_s5 + $0x38] sm:$0xff] }
  0x1b   :  { %420 = vmatpush3.bf16.msra.mxu0 %v419_v7  ;;  %v440_v38 = vpack.c.bf16 %v235_v37, %v234_v36  ;;  %v443_v41 = vpack.c.bf16 %v237_v40, %v236_v39  ;;  %v338_v42 = vld [vmem:[%s658_s4] ss:$0 sm:$0xff]  ;;  %s482_s4 = scalar_lea.vmem %s327_s26, 128 }
  0x1c   :  { %433 = vmatprep.subr.bf16.mxu0 %v511_v0  ;;  %v341_v51 = vld [vmem:[%s660_s6] ss:$0 sm:$0xff]  ;;  %p483_p8 = scmp.ne.s32.totalorder %s327_s26, %s482_s4  ;;  %p488_p10 = scmp.lt.s32.totalorder %s482_s4, %s482_s4 }
  0x1d   :  { %426 = vmatpush3.bf16.msra.mxu1 %v425_v14 }
  0x1e   :  { %375 = vmatmul.mubr.msk.f32.vlgmr.msra.gmra.mrb[0].mxu0 %vm53_vm1, %v41_v8  ;;  %427 = vmatprep.subr.bf16.mxu1 %v511_v0  ;;  %p489_p11 = por %p488_p10, %p487_p9 }
  0x1f   :  { %412 = vmatprep.mubr.msk.f32.mxu0 %vm512_vm0, %v513_v1  ;;  %435 = vmatpush3.bf16.msra.mxu0 %v434_v32 }
  0x20   :  { %436 = vmatprep.subr.bf16.mxu0 %v511_v0  ;;  %p490_p12 = pnand %p489_p11, %p483_p8 }
  0x21   :  { %429 = vmatpush3.bf16.msra.mxu1 %v428_v17 }
  0x22   :  { %430 = vmatprep.subr.bf16.mxu1 %v511_v0 }
  0x23   :  { %438 = vmatpush3.bf16.msra.mxu0 %v437_v35 }
  0x24   :  { %439 = vmatprep.subr.bf16.mxu0 %v511_v0 }
  0x25   :  { %432 = vmatpush3.bf16.msra.mxu1 %v431_v20 }
  0x27   :  { %441 = vmatpush3.bf16.msra.mxu0 %v440_v38 }
  0x28   :  { %442 = vmatprep.subr.bf16.mxu0 %v511_v0 }
  0x2b   :  { %444 = vmatpush3.bf16.msra.mxu0 %v443_v41 }
  0xf1   :  { %v123_v22 = vpop.f32.mrb[0].mxu0 }
  0xf2   :  { %v124_v23 = vadd.f32 %v335_v21, %v123_v22  ;;  %v376_v24 = vpop.f32.mrb[1].mxu0 }
  0xf4   :  { %v337_v25 = vmul.f32 -1.442695, %v124_v23 }
  0xf6   :  { %452 = vpow2.f32 %v337_v25 }
 0x100   :  { %v453_v26 = vpop.eup %452 }
 0x101   :  { %v130_v27 = vadd.f32 1.0, %v453_v26 }
 0x103   :  { %454 = vrcp.f32 %v130_v27 }
 0x10d   :  { %v455_v28 = vpop.eup %454 }
 0x10e   :  { %v133_v29 = vmul.f32 %v455_v28, %v124_v23 }
 0x110   :  { %394 = vmatmul.mubr.msk.f32.vlgmr.msra.gmra.mrb[0].mxu1 %vm149_vm2, %v133_v29 }
 0x1e3   :  { %v219_v43 = vpop.f32.mrb[0].mxu1 }
 0x1e4   :  { %v220_v44 = vadd.f32 %v338_v42, %v219_v43  ;;  %v395_v45 = vpop.f32.mrb[1].mxu1 }
 0x1e6   :  { %v340_v46 = vmul.f32 -1.442695, %v220_v44 }
 0x1e8   :  { %456 = vpow2.f32 %v340_v46 }
 0x1f2   :  { %v457_v47 = vpop.eup %456 }
 0x1f3   :  { %v226_v48 = vadd.f32 1.0, %v457_v47 }
 0x1f5   :  { %458 = vrcp.f32 %v226_v48 }
 0x1ff   :  { %v459_v49 = vpop.eup %458 }
 0x200   :  { %v229_v50 = vmul.f32 %v459_v49, %v220_v44 }
 0x202   :  { %413 = vmatmul.mubr.msk.f32.vlgmr.msra.gmra.mrb[2].mxu0 %vm149_vm2, %v229_v50 }
 0x2d5   :  { %v314_v52 = vpop.f32.mrb[2].mxu0 }
 0x2d6   :  { %v315_v53 = vadd.f32 %v341_v51, %v314_v52  ;;  %v414_v54 = vpop.f32.mrb[3].mxu0 }
 0x2d8   :  { %319 = vst.msk [vmem:[#allocation5] sm:$0xff] %vm318_vm3, %v315_v53 }
 0x2d9   :  { %493 = shalt.err (!%p490_p12)
}
 0x2da   :  { %s494_s29 = scalar_lea.hbm %s661_s7, 128 }
 0x2db   :  { %p495_p13 = scmp.ne.s32.totalorder %s661_s7, %s494_s29  ;;  %p498_p0 = scmp.lt.u32.totalorder %s494_s29, %s661_s7 }
 0x2dd   :  { %p500_p1 = pnand %p498_p0, %p495_p13 }
 0x2df   :  { %503 = shalt.err (!%p500_p1)
}
 0x2e0   :  { %329 = dma.vmem_to_hbm [thread:$0]  %s327_s26, 128, %s661_s7, [#allocation4]  }
 0x2e1   :  { %506 = dma.done.wait [#allocation4], 128  }
 0x2e2   :  { %507 = vsyncadd [#allocation4], 4294967168 }
 0x2e3   :  { %333 = vsyncpa [#allocation3], 1 }
 0x2e4   :  { %334 = vsyncpa [#allocation4], 1 }

</bundles_post_ra>
